<compile_context>
chip_gen: v5e
topology: v5e:2x2
jax: 0.10.0
libtpu: 0.0.40
codegen_flags: <defaults>
</compile_context>

<pallas_src>
import functools

import jax
import jax.numpy as jnp
from jax.experimental import pallas as pl
from jax.experimental.pallas import tpu as pltpu

NEG_SLOPE = 0.01  # nn.LeakyReLU default negative slope
BN_EPS = 1e-5


# ----------------------------------------------------------------------------
# Pallas kernels
# ----------------------------------------------------------------------------
def _dual_branch_kernel(x_ref, w_ref, b_ref, o_ref, *, c_split):
    """(patches @ [W1|Wone]) + [shift1|shift_one]; LeakyReLU on first half only."""
    acc = jnp.dot(x_ref[...], w_ref[...], preferred_element_type=jnp.float32)
    acc = acc + b_ref[...]
    col = jax.lax.broadcasted_iota(jnp.int32, acc.shape, 1)
    leaky_mask = col < c_split  # conv-branch half gets LeakyReLU, "one" half does not
    o_ref[...] = jnp.where(leaky_mask & (acc < 0), NEG_SLOPE * acc, acc).astype(o_ref.dtype)


def _conv2_residual_kernel(x_ref, w_ref, b_ref, r_ref, o_ref):
    """LeakyReLU((patches @ W2) + shift2 + one_branch)."""
    acc = jnp.dot(x_ref[...], w_ref[...], preferred_element_type=jnp.float32)
    y = acc + b_ref[...] + r_ref[...]
    o_ref[...] = jnp.where(y >= 0, y, NEG_SLOPE * y).astype(o_ref.dtype)


def _pick_tm(m, tm_max=1024):
    """Largest row tile <= tm_max that still yields >=2 grid steps (v7x megacore)."""
    tm = min(tm_max, max(8, m // 2))
    tm = max(8, (tm // 8) * 8)
    return tm


def dual_branch_matmul(p, w, shift, c_split, *, tm_max=1024):
    """p: (M, K) bf16, w: (K, 2C) bf16, shift: (2C,) f32 -> (M, 2C) f32."""
    M, K = p.shape
    K2, C2 = w.shape
    assert K == K2
    tm = _pick_tm(M, tm_max)
    shift2 = shift.reshape(1, C2).astype(jnp.float32)
    return pl.pallas_call(
        functools.partial(_dual_branch_kernel, c_split=c_split),
        out_shape=jax.ShapeDtypeStruct((M, C2), jnp.float32),
        grid_spec=pltpu.PrefetchScalarGridSpec(
            num_scalar_prefetch=0,
            grid=(pl.cdiv(M, tm),),
            in_specs=[
                pl.BlockSpec((tm, K), lambda i: (i, 0)),
                pl.BlockSpec((K, C2), lambda i: (0, 0)),
                pl.BlockSpec((1, C2), lambda i: (0, 0)),
            ],
            out_specs=pl.BlockSpec((tm, C2), lambda i: (i, 0)),
        ),
        compiler_params=pltpu.CompilerParams(dimension_semantics=("parallel",)),
    )(p, w, shift2)


def conv2_residual_matmul(p, w, shift, residual, *, tm_max=1024):
    """p: (M, K) bf16, w: (K, C) bf16, shift: (C,) f32, residual: (M, C) f32 -> (M, C) f32."""
    M, K = p.shape
    K2, C = w.shape
    assert K == K2 and residual.shape == (M, C)
    tm = _pick_tm(M, tm_max)
    shift2 = shift.reshape(1, C).astype(jnp.float32)
    return pl.pallas_call(
        _conv2_residual_kernel,
        out_shape=jax.ShapeDtypeStruct((M, C), jnp.float32),
        grid_spec=pltpu.PrefetchScalarGridSpec(
            num_scalar_prefetch=0,
            grid=(pl.cdiv(M, tm),),
            in_specs=[
                pl.BlockSpec((tm, K), lambda i: (i, 0)),
                pl.BlockSpec((K, C), lambda i: (0, 0)),
                pl.BlockSpec((1, C), lambda i: (0, 0)),
                pl.BlockSpec((tm, C), lambda i: (i, 0)),
            ],
            out_specs=pl.BlockSpec((tm, C), lambda i: (i, 0)),
        ),
        compiler_params=pltpu.CompilerParams(dimension_semantics=("parallel",)),
    )(p, w, shift2, residual)


# ----------------------------------------------------------------------------
# Plain-JAX glue (layout prep, interpolation, patch extraction)
# ----------------------------------------------------------------------------
def upsample_bilinear_align_corners(x, scale):
    """x: (N, H, W, C) -> (N, H*scale, W*scale, C), bilinear, align_corners=True."""
    N, H, W, C = x.shape
    Ho, Wo = H * scale, W * scale

    def coords(n_in, n_out):
        if n_out == 1:
            t = jnp.zeros((1,), jnp.float32)
        else:
            t = jnp.arange(n_out, dtype=jnp.float32) * ((n_in - 1) / (n_out - 1))
        i0 = jnp.clip(jnp.floor(t).astype(jnp.int32), 0, n_in - 1)
        i1 = jnp.clip(i0 + 1, 0, n_in - 1)
        w = t - i0.astype(jnp.float32)
        return i0, i1, w

    y0, y1, wy = coords(H, Ho)
    x0, x1, wx = coords(W, Wo)

    rows0 = x[:, y0, :, :]
    rows1 = x[:, y1, :, :]
    wy = wy[None, :, None, None]
    rows = rows0 * (1.0 - wy) + rows1 * wy

    cols0 = rows[:, :, x0, :]
    cols1 = rows[:, :, x1, :]
    wx = wx[None, None, :, None]
    return cols0 * (1.0 - wx) + cols1 * wx


def im2col_3x3(x):
    """x: (N, H, W, C) -> (N*H*W, 9*C) patches, padding=1, stride=1 (keeps dtype)."""
    N, H, W, C = x.shape
    xp = jnp.pad(x, ((0, 0), (1, 1), (1, 1), (0, 0)))
    patches = [xp[:, dy:dy + H, dx:dx + W, :] for dy in range(3) for dx in range(3)]
    p = jnp.concatenate(patches, axis=-1)  # (N, H, W, 9*C), (kh, kw, C) ordering
    return p.reshape(N * H * W, 9 * C)


def fold_conv_bn(w_oihw, conv_bias, gamma, beta, mean, var):
    """Fold Conv2d(3x3)+bias+eval BatchNorm: scale folded into weight, shift returned."""
    cout = w_oihw.shape[0]
    w = jnp.transpose(w_oihw, (2, 3, 1, 0)).reshape(-1, cout)  # (9*Cin, Cout), (kh,kw,Cin)
    scale = gamma / jnp.sqrt(var + BN_EPS)
    shift = beta + (conv_bias - mean) * scale
    return w * scale[None, :], shift


def deconv_forward(deeper_nchw, shallower_nchw, params, scale_factor=2):
    """Deconv.forward: upsample(deeper), cat([shallower, deeper]), LeakyReLU(one(x)+conv(x))."""
    deeper = jnp.transpose(deeper_nchw, (0, 2, 3, 1))       # NHWC
    shallow = jnp.transpose(shallower_nchw, (0, 2, 3, 1))   # NHWC

    deeper_up = upsample_bilinear_align_corners(deeper, scale_factor)
    x = jnp.concatenate([shallow, deeper_up], axis=-1)      # == torch.cat(dim=1) in NCHW
    N, H, W, _ = x.shape
    c_out = params["w2"].shape[1]

    # Fused branch-1 matmul: conv1 (with LeakyReLU) and "one" branch share p1.
    p1 = im2col_3x3(x.astype(jnp.bfloat16))                  # (M, 9*in_dims) bf16
    yz = dual_branch_matmul(p1, params["w1o"], params["shift1o"], c_out)
    y1 = yz[:, :c_out]                                        # conv branch after BN+LeakyReLU
    z_one = yz[:, c_out:]                                     # "one" branch after BN (f32)

    # Second conv, fused with residual add + final LeakyReLU.
    y1 = y1.reshape(N, H, W, c_out).astype(jnp.bfloat16)
    p2 = im2col_3x3(y1)                                       # (M, 9*out_dims) bf16
    out = conv2_residual_matmul(p2, params["w2"], params["shift2"], z_one)

    out = out.reshape(N, H, W, c_out)
    return jnp.transpose(out, (0, 3, 1, 2))                   # back to NCHW


# ----------------------------------------------------------------------------
# Deterministic parameter construction + demo run
# ----------------------------------------------------------------------------
def init_conv(k, cin, cout):
    k1, k2 = jax.random.split(k)
    w = 0.1 * jax.random.normal(k1, (cout, cin, 3, 3), jnp.float32)
    b = 0.1 * jax.random.normal(k2, (cout,), jnp.float32)
    return w, b


def init_bn(k, c):
    k1, k2, k3, k4 = jax.random.split(k, 4)
    gamma = 1.0 + 0.1 * jax.random.normal(k1, (c,), jnp.float32)
    beta = 0.1 * jax.random.normal(k2, (c,), jnp.float32)
    mean = 0.1 * jax.random.normal(k3, (c,), jnp.float32)
    var = 1.0 + jnp.abs(jax.random.normal(k4, (c,), jnp.float32))
    return gamma, beta, mean, var


def build_params(key, in_dims, out_dims):
    keys = jax.random.split(key, 6)
    # conv branch
    w1, bi1 = init_conv(keys[0], in_dims, out_dims)
    bn1 = init_bn(keys[1], out_dims)
    w2, bi2 = init_conv(keys[2], out_dims, out_dims)
    bn2 = init_bn(keys[3], out_dims)
    # one branch
    wo, bio = init_conv(keys[4], in_dims, out_dims)
    bno = init_bn(keys[5], out_dims)

    w1m, s1 = fold_conv_bn(w1, bi1, *bn1)
    w2m, s2 = fold_conv_bn(w2, bi2, *bn2)
    wom, so = fold_conv_bn(wo, bio, *bno)

    return {
        # fused [conv1 | one] weight / shift
        "w1o": jnp.concatenate([w1m, wom], axis=1).astype(jnp.bfloat16),
        "shift1o": jnp.concatenate([s1, so], axis=0),
        # second conv of the conv branch
        "w2": w2m.astype(jnp.bfloat16),
        "shift2": s2,
    }


if __name__ == "__main__":
    key = jax.random.PRNGKey(0)
    kd, ks, kp = jax.random.split(key, 3)

    # Small shapes consistent with the module: in_dims = C_shallow + C_deep.
    N = 2
    c_shallow, c_deep = 4, 4
    in_dims = c_shallow + c_deep     # 8
    out_dims = 8
    H = W = 16                       # shallower spatial; deeper is H/2 x W/2

    deeper = jax.random.normal(kd, (N, c_deep, H // 2, W // 2), jnp.float32)
    shallower = jax.random.normal(ks, (N, c_shallow, H, W), jnp.float32)

    params = build_params(kp, in_dims, out_dims)

    fwd = jax.jit(lambda d, s: deconv_forward(d, s, params, scale_factor=2))
    out = fwd(deeper, shallower)
    jax.block_until_ready(out)
    assert out.shape == (N, out_dims, H, W)
    print("KERNEL_OK")
</pallas_src>

<mosaic_0001>
module attributes {stable_mosaic.version = 11 : i64} {
  func.func @_dual_branch_kernel(%arg0: i32, %arg1: memref<256x72xbf16, #tpu.memory_space<vmem>>, %arg2: memref<72x16xbf16, #tpu.memory_space<vmem>>, %arg3: memref<1x16xf32, #tpu.memory_space<vmem>>, %arg4: memref<256x16xf32, #tpu.memory_space<vmem>>) attributes {dimension_semantics = [#tpu.dimension_semantics<parallel>], iteration_bounds = array<i64: 2>, scalar_prefetch = 0 : i64, scratch_operands = 0 : i64, tpu.core_type = #tpu.core_type<tc>, window_params = [{transform_indices = @transform_0, window_bounds = array<i64: 256, 72>}, {pipeline_mode = #tpu.pipeline_mode<synchronous>, transform_indices = @transform_1, window_bounds = array<i64: 72, 16>}, {pipeline_mode = #tpu.pipeline_mode<synchronous>, transform_indices = @transform_2, window_bounds = array<i64: 1, 16>}, {transform_indices = @transform_3, window_bounds = array<i64: 256, 16>}]} {
    %c0 = arith.constant 0 : index
    %c0_0 = arith.constant 0 : index
    %0 = vector.load %arg1[%c0, %c0_0] : memref<256x72xbf16, #tpu.memory_space<vmem>>, vector<256x72xbf16>
    %c0_1 = arith.constant 0 : index
    %c0_2 = arith.constant 0 : index
    %1 = vector.load %arg2[%c0_1, %c0_2] : memref<72x16xbf16, #tpu.memory_space<vmem>>, vector<72x16xbf16>
    %cst = arith.constant dense<0.000000e+00> : vector<256x16xf32>
    %2 = tpu.matmul %0, %1, %cst {dimension_numbers = #tpu.dot_dimension_numbers<[1], [0], [0], [1], [0, 0, 1, 1], [], []>} : vector<256x72xbf16>, vector<72x16xbf16>, vector<256x16xf32> -> vector<256x16xf32>
    %c0_3 = arith.constant 0 : index
    %c0_4 = arith.constant 0 : index
    %3 = vector.load %arg3[%c0_3, %c0_4] : memref<1x16xf32, #tpu.memory_space<vmem>>, vector<1x16xf32>
    %4 = vector.broadcast %3 : vector<1x16xf32> to vector<256x16xf32>
    %5 = arith.addf %2, %4 : vector<256x16xf32>
    %6 = tpu.iota {dimensions = array<i32: 1>} : vector<256x16xi32>
    %c8_i32 = arith.constant 8 : i32
    %7 = vector.broadcast %c8_i32 : i32 to vector<256x16xi32>
    %8 = arith.cmpi slt, %6, %7 : vector<256x16xi32>
    %cst_5 = arith.constant 0.000000e+00 : f32
    %9 = vector.broadcast %cst_5 : f32 to vector<256x16xf32>
    %10 = arith.cmpf olt, %5, %9 : vector<256x16xf32>
    %11 = arith.andi %8, %10 : vector<256x16xi1>
    %cst_6 = arith.constant 0.00999999977 : f32
    %12 = vector.broadcast %cst_6 : f32 to vector<256x16xf32>
    %13 = arith.mulf %12, %5 : vector<256x16xf32>
    %14 = arith.select %11, %13, %5 : vector<256x16xi1>, vector<256x16xf32>
    %c0_7 = arith.constant 0 : index
    %c0_8 = arith.constant 0 : index
    %15 = vector.load %arg4[%c0_7, %c0_8] : memref<256x16xf32, #tpu.memory_space<vmem>>, vector<256x16xf32>
    tpu.vector_store %arg4[%c0_7, %c0_8], %14 {strides = array<i32>} : memref<256x16xf32, #tpu.memory_space<vmem>>, vector<256x16xf32>,
    return
  }
  func.func @transform_0(%arg0: i32) -> (i32, i32) {
    %c0_i32 = arith.constant 0 : i32
    %c0_i32_0 = arith.constant 0 : i32
    return %arg0, %c0_i32 : i32, i32
  }
  func.func @transform_1(%arg0: i32) -> (i32, i32) {
    %c0_i32 = arith.constant 0 : i32
    %c0_i32_0 = arith.constant 0 : i32
    %c0_i32_1 = arith.constant 0 : i32
    return %c0_i32, %c0_i32_0 : i32, i32
  }
  func.func @transform_2(%arg0: i32) -> (i32, i32) {
    %c0_i32 = arith.constant 0 : i32
    %c0_i32_0 = arith.constant 0 : i32
    %c0_i32_1 = arith.constant 0 : i32
    return %c0_i32, %c0_i32_0 : i32, i32
  }
  func.func @transform_3(%arg0: i32) -> (i32, i32) {
    %c0_i32 = arith.constant 0 : i32
    %c0_i32_0 = arith.constant 0 : i32
    return %arg0, %c0_i32 : i32, i32
  }
}

module attributes {stable_mosaic.version = 11 : i64} {
  func.func @_conv2_residual_kernel(%arg0: i32, %arg1: memref<256x72xbf16, #tpu.memory_space<vmem>>, %arg2: memref<72x8xbf16, #tpu.memory_space<vmem>>, %arg3: memref<1x8xf32, #tpu.memory_space<vmem>>, %arg4: memref<256x8xf32, #tpu.memory_space<vmem>>, %arg5: memref<256x8xf32, #tpu.memory_space<vmem>>) attributes {dimension_semantics = [#tpu.dimension_semantics<parallel>], iteration_bounds = array<i64: 2>, scalar_prefetch = 0 : i64, scratch_operands = 0 : i64, tpu.core_type = #tpu.core_type<tc>, window_params = [{transform_indices = @transform_0, window_bounds = array<i64: 256, 72>}, {pipeline_mode = #tpu.pipeline_mode<synchronous>, transform_indices = @transform_1, window_bounds = array<i64: 72, 8>}, {pipeline_mode = #tpu.pipeline_mode<synchronous>, transform_indices = @transform_2, window_bounds = array<i64: 1, 8>}, {transform_indices = @transform_3, window_bounds = array<i64: 256, 8>}, {transform_indices = @transform_4, window_bounds = array<i64: 256, 8>}]} {
    %c0 = arith.constant 0 : index
    %c0_0 = arith.constant 0 : index
    %0 = vector.load %arg1[%c0, %c0_0] : memref<256x72xbf16, #tpu.memory_space<vmem>>, vector<256x72xbf16>
    %c0_1 = arith.constant 0 : index
    %c0_2 = arith.constant 0 : index
    %1 = vector.load %arg2[%c0_1, %c0_2] : memref<72x8xbf16, #tpu.memory_space<vmem>>, vector<72x8xbf16>
    %cst = arith.constant dense<0.000000e+00> : vector<256x8xf32>
    %2 = tpu.matmul %0, %1, %cst {dimension_numbers = #tpu.dot_dimension_numbers<[1], [0], [0], [1], [0, 0, 1, 1], [], []>} : vector<256x72xbf16>, vector<72x8xbf16>, vector<256x8xf32> -> vector<256x8xf32>
    %c0_3 = arith.constant 0 : index
    %c0_4 = arith.constant 0 : index
    %3 = vector.load %arg3[%c0_3, %c0_4] : memref<1x8xf32, #tpu.memory_space<vmem>>, vector<1x8xf32>
    %4 = vector.broadcast %3 : vector<1x8xf32> to vector<256x8xf32>
    %5 = arith.addf %2, %4 : vector<256x8xf32>
    %c0_5 = arith.constant 0 : index
    %c0_6 = arith.constant 0 : index
    %6 = vector.load %arg4[%c0_5, %c0_6] : memref<256x8xf32, #tpu.memory_space<vmem>>, vector<256x8xf32>
    %7 = arith.addf %5, %6 : vector<256x8xf32>
    %cst_7 = arith.constant 0.000000e+00 : f32
    %8 = vector.broadcast %cst_7 : f32 to vector<256x8xf32>
    %9 = arith.cmpf oge, %7, %8 : vector<256x8xf32>
    %cst_8 = arith.constant 0.00999999977 : f32
    %10 = vector.broadcast %cst_8 : f32 to vector<256x8xf32>
    %11 = arith.mulf %10, %7 : vector<256x8xf32>
    %12 = arith.select %9, %7, %11 : vector<256x8xi1>, vector<256x8xf32>
    %c0_9 = arith.constant 0 : index
    %c0_10 = arith.constant 0 : index
    %13 = vector.load %arg5[%c0_9, %c0_10] : memref<256x8xf32, #tpu.memory_space<vmem>>, vector<256x8xf32>
    tpu.vector_store %arg5[%c0_9, %c0_10], %12 {strides = array<i32>} : memref<256x8xf32, #tpu.memory_space<vmem>>, vector<256x8xf32>,
    return
  }
  func.func @transform_0(%arg0: i32) -> (i32, i32) {
    %c0_i32 = arith.constant 0 : i32
    %c0_i32_0 = arith.constant 0 : i32
    return %arg0, %c0_i32 : i32, i32
  }
  func.func @transform_1(%arg0: i32) -> (i32, i32) {
    %c0_i32 = arith.constant 0 : i32
    %c0_i32_0 = arith.constant 0 : i32
    %c0_i32_1 = arith.constant 0 : i32
    return %c0_i32, %c0_i32_0 : i32, i32
  }
  func.func @transform_2(%arg0: i32) -> (i32, i32) {
    %c0_i32 = arith.constant 0 : i32
    %c0_i32_0 = arith.constant 0 : i32
    %c0_i32_1 = arith.constant 0 : i32
    return %c0_i32, %c0_i32_0 : i32, i32
  }
  func.func @transform_3(%arg0: i32) -> (i32, i32) {
    %c0_i32 = arith.constant 0 : i32
    %c0_i32_0 = arith.constant 0 : i32
    return %arg0, %c0_i32 : i32, i32
  }
  func.func @transform_4(%arg0: i32) -> (i32, i32) {
    %c0_i32 = arith.constant 0 : i32
    %c0_i32_0 = arith.constant 0 : i32
    return %arg0, %c0_i32 : i32, i32
  }
}

</mosaic_0001>

<bundles_post_ra>
// kernel: _lambda_.2
= control target key start
LH: loop header
LB: loop body
LE: loop exit
PB: predicated region body
PF: predicated region fallthrough
CT: control target
= control target key end

     0   :  { %s868_s12 = smov 0   ;;  %s1108_s0 = inlined_call_operand.vmem [shape: bf16[512,72], index: 0, kind: input, shape index: {}]   ;;  %s1109_s1 = inlined_call_operand.vmem [shape: bf16[72,16], index: 1, kind: input, shape index: {}]   ;;  %s1110_s2 = inlined_call_operand.vmem [shape: f32[1,16], index: 2, kind: input, shape index: {}]   ;;  %s1111_s3 = inlined_call_operand.vmem [shape: f32[512,16], index: 3, kind: output, shape index: {}]  }
   0x1 LB: > { %s689_s13 = sadd.s32 4294967295, %s846_s12   ;;  %p693_p0 = scmp.ge.s32.totalorder %s846_s12, 1  ;;  %s846_s12 = sphi %s868_s12, %s13_s12  }
   0x2   : > { %p138_p1 = scmp.lt.s32.totalorder %s846_s12, 3 }
   0x4   : > { %p139_p2 = pnand %p693_p0, %p138_p1 }
   0x5   : > { %s694_s16 = sshll.u32 (!%p139_p2), %s689_s13, 5 }
   0x6   : > { %142 = sbr.rel (%p139_p2) target bundleno = 232 (0xe8), region = 32  ;;  %p163_p3 = scmp.lt.s32.totalorder (!%p139_p2), %s694_s16, 63 }
   0xb   : > { %v215_v0 = vld [vmem:[%s1109_s1 + $0x20] sm:$0xf]  ;;  %vm376_vm0 = vcmask 1043456   ;;  %v815_v4 = vld [vmem:[%s1109_s1 + $0x18] sm:$0xff]  ;;  %v814_v5 = vld [vmem:[%s1109_s1 + $0x10] sm:$0xff]  ;;  %s1113_s16 = smov (!%p163_p3, %s694_s16), 63  ;;  %v469_v24 = vlaneseq }
   0xc   : > { %v317_v1 = vunpack.c.l.b16 %v215_v0  ;;  %v813_v6 = vld [vmem:[%s1109_s1 + $0x8] sm:$0xff]  ;;  %s695_s23 = sshll.u32 %s1113_s16, 2  ;;  %v812_v7 = vld [vmem:[%s1109_s1] sm:$0xff]  ;;  %vm327_vm1 = vcmask 588800   ;;  %s697_s4 = sshll.u32 %s1113_s16, 3  ;;  %vm600_vm3 = vcmask 130048  }
   0xd   : > { %s897_s28 = scalar_lea.vmem %s1108_s0, %s695_s23  ;;  %v934_v25 = vld [vmem:[%s1110_s2] ss:$0 sm:$0xff]  ;;  %v936_v26 = vand.u32 127, %v469_v24  ;;  %s945_s7 = scalar_lea.vmem %s1111_s3, %s697_s4 }
   0xe   : > { %v322_v2 = vpack.c.b16 %v317_v1, %v317_v1  ;;  %v796_v8 = vld [vmem:[%s897_s28] sm:$0xff]  ;;  %v797_v12 = vld [vmem:[%s897_s28 + $0x8] sm:$0xff]  ;;  %v798_v16 = vld [vmem:[%s897_s28 + $0x10] sm:$0xff] }
   0xf   : > { %v800_v9 = vld [vmem:[%s897_s28 + $0x20] sm:$0xff]  ;;  %v801_v13 = vld [vmem:[%s897_s28 + $0x28] sm:$0xff]  ;;  %v802_v17 = vld [vmem:[%s897_s28 + $0x30] sm:$0xff]  ;;  %vm471_vm2 = vcmp.lt.s32.totalorder %v936_v26, 8 }
  0x10   : > { %v378_v3 = vsel %vm376_vm0, %v322_v2, 0  ;;  %v804_v10 = vld [vmem:[%s897_s28 + $0x40] sm:$0xff]  ;;  %v805_v14 = vld [vmem:[%s897_s28 + $0x48] sm:$0xff]  ;;  %v806_v18 = vld [vmem:[%s897_s28 + $0x50] sm:$0xff] }
  0x11   : > { %383 = vmatpush.bf16.msra.mxu0 %v378_v3  ;;  %816 = vmatpush.bf16.msra.mxu1 %v378_v3  ;;  %v808_v11 = vld [vmem:[%s897_s28 + $0x60] sm:$0xff]  ;;  %v809_v15 = vld [vmem:[%s897_s28 + $0x68] sm:$0xff]  ;;  %v810_v19 = vld [vmem:[%s897_s28 + $0x70] sm:$0xff] }
  0x12   : > { %817 = vmatpush.bf16.msra.mxu2 %v378_v3  ;;  %818 = vmatpush.bf16.msra.mxu3 %v378_v3  ;;  %v799_v20 = vld [vmem:[%s897_s28 + $0x18] sm:$0xff] }
  0x13   : > { %v803_v21 = vld [vmem:[%s897_s28 + $0x38] sm:$0xff] }
  0x14   : > { %v807_v22 = vld [vmem:[%s897_s28 + $0x58] sm:$0xff] }
  0x15   : > { %384 = vmatpush.bf16.msra.mxu0 %v815_v4  ;;  %819 = vmatpush.bf16.msra.mxu1 %v815_v4  ;;  %v811_v23 = vld [vmem:[%s897_s28 + $0x78] sm:$0xff] }
  0x16   : > { %820 = vmatpush.bf16.msra.mxu2 %v815_v4  ;;  %821 = vmatpush.bf16.msra.mxu3 %v815_v4 }
  0x19   : > { %385 = vmatpush.bf16.msra.mxu0 %v814_v5  ;;  %822 = vmatpush.bf16.msra.mxu1 %v814_v5 }
  0x1a   : > { %823 = vmatpush.bf16.msra.mxu2 %v814_v5  ;;  %824 = vmatpush.bf16.msra.mxu3 %v814_v5 }
  0x1d   : > { %386 = vmatpush.bf16.msra.mxu0 %v813_v6  ;;  %825 = vmatpush.bf16.msra.mxu1 %v813_v6 }
  0x1e   : > { %826 = vmatpush.bf16.msra.mxu2 %v813_v6  ;;  %827 = vmatpush.bf16.msra.mxu3 %v813_v6 }
  0x21   : > { %387 = vmatpush.bf16.msra.mxu0 %v812_v7  ;;  %828 = vmatpush.bf16.msra.mxu1 %v812_v7 }
  0x22   : > { %829 = vmatpush.bf16.msra.mxu2 %v812_v7  ;;  %830 = vmatpush.bf16.msra.mxu3 %v812_v7 }
  0x24   : > { %778 = vmatmul.msk.bf16.vlgmr.msra.gmra.mxu0 %vm327_vm1, %v796_v8  ;;  %782 = vmatmul.msk.bf16.vlgmr.msra.gmra.mxu1 %vm327_vm1, %v800_v9 }
  0x25   : > { %786 = vmatmul.msk.bf16.vlgmr.msra.gmra.mxu2 %vm327_vm1, %v804_v10  ;;  %790 = vmatmul.msk.bf16.vlgmr.msra.gmra.mxu3 %vm327_vm1, %v808_v11 }
  0x34   : > { %779 = vmatmul.msk.bf16.gmra.mxu0 %vm327_vm1, %v797_v12  ;;  %783 = vmatmul.msk.bf16.gmra.mxu1 %vm327_vm1, %v801_v13 }
  0x35   : > { %787 = vmatmul.msk.bf16.gmra.mxu2 %vm327_vm1, %v805_v14  ;;  %791 = vmatmul.msk.bf16.gmra.mxu3 %vm327_vm1, %v809_v15 }
  0x44   : > { %780 = vmatmul.msk.bf16.gmra.mxu0 %vm327_vm1, %v798_v16  ;;  %784 = vmatmul.msk.bf16.gmra.mxu1 %vm327_vm1, %v802_v17 }
  0x45   : > { %788 = vmatmul.msk.bf16.gmra.mxu2 %vm327_vm1, %v806_v18  ;;  %792 = vmatmul.msk.bf16.gmra.mxu3 %vm327_vm1, %v810_v19 }
  0x54   : > { %781 = vmatmul.msk.bf16.gmra.mxu0 %vm327_vm1, %v799_v20  ;;  %785 = vmatmul.msk.bf16.gmra.mxu1 %vm327_vm1, %v803_v21 }
  0x55   : > { %789 = vmatmul.msk.bf16.gmra.mxu2 %vm327_vm1, %v807_v22  ;;  %793 = vmatmul.msk.bf16.gmra.mxu3 %vm327_vm1, %v811_v23 }
  0xa1   : > { %v389_v27 = vpop.f32.mrf.mxu0  ;;  %v409_v28 = vpop.f32.mrf.mxu1 }
  0xa2   : > { %v390_v29 = vadd.f32 %v934_v25, %v389_v27  ;;  %v410_v30 = vadd.f32 %v934_v25, %v409_v28 }
  0xa4   : > { %vm472_vm4 = vcmp.lt.f32.partialorder %v390_v29, 0.0  ;;  %v536_v31 = vmul.f32 0.01, %v390_v29  ;;  %vm480_vm5 = vcmp.lt.f32.partialorder %v410_v30, 0.0  ;;  %v544_v32 = vmul.f32 0.01, %v410_v30 }
  0xa5   : > { %vm504_vm6 = vmand %vm471_vm2, %vm472_vm4 }
  0xa6   : > { %v568_v33 = vsel %vm504_vm6, %v536_v31, %v390_v29  ;;  %vm512_vm7 = vmand %vm471_vm2, %vm480_vm5 }
  0xa7   : > { %601 = vst.msk [vmem:[%s945_s7] sm:$0xff] %vm600_vm3, %v568_v33  ;;  %v576_v34 = vsel %vm512_vm7, %v544_v32, %v410_v30 }
  0xa8   : > { %609 = vst.msk [vmem:[%s945_s7 + $0x40] sm:$0xff] %vm600_vm3, %v576_v34  ;;  %v429_v35 = vpop.f32.mrf.mxu2  ;;  %v449_v36 = vpop.f32.mrf.mxu3 }
  0xa9   : > { %v430_v37 = vadd.f32 %v934_v25, %v429_v35  ;;  %v450_v38 = vadd.f32 %v934_v25, %v449_v36  ;;  %v391_v39 = vpop.f32.mrf.mxu0  ;;  %v411_v40 = vpop.f32.mrf.mxu1 }
  0xaa   : > { %v392_v41 = vadd.f32 %v934_v25, %v391_v39  ;;  %v412_v42 = vadd.f32 %v934_v25, %v411_v40 }
  0xab   : > { %vm488_vm8 = vcmp.lt.f32.partialorder %v430_v37, 0.0  ;;  %v552_v43 = vmul.f32 0.01, %v430_v37  ;;  %vm496_vm9 = vcmp.lt.f32.partialorder %v450_v38, 0.0  ;;  %v560_v44 = vmul.f32 0.01, %v450_v38 }
  0xac   : > { %vm520_vm10 = vmand %vm471_vm2, %vm488_vm8  ;;  %vm473_vm11 = vcmp.lt.f32.partialorder %v392_v41, 0.0  ;;  %v537_v45 = vmul.f32 0.01, %v392_v41  ;;  %vm481_vm12 = vcmp.lt.f32.partialorder %v412_v42, 0.0  ;;  %v545_v46 = vmul.f32 0.01, %v412_v42 }
  0xad   : > { %v584_v47 = vsel %vm520_vm10, %v552_v43, %v430_v37  ;;  %vm528_vm13 = vmand %vm471_vm2, %vm496_vm9 }
  0xae   : > { %617 = vst.msk [vmem:[%s945_s7 + $0x80] sm:$0xff] %vm600_vm3, %v584_v47  ;;  %v592_v48 = vsel %vm528_vm13, %v560_v44, %v450_v38  ;;  %vm505_vm14 = vmand %vm471_vm2, %vm473_vm11 }
  0xaf   : > { %625 = vst.msk [vmem:[%s945_s7 + $0xc0] sm:$0xff] %vm600_vm3, %v592_v48  ;;  %v569_v49 = vsel %vm505_vm14, %v537_v45, %v392_v41  ;;  %vm513_vm15 = vmand %vm471_vm2, %vm481_vm12 }
  0xb0   : > { %602 = vst.msk [vmem:[%s945_s7 + $0x8] sm:$0xff] %vm600_vm3, %v569_v49  ;;  %v577_v50 = vsel %vm513_vm15, %v545_v46, %v412_v42  ;;  %v431_v51 = vpop.f32.mrf.mxu2  ;;  %v451_v52 = vpop.f32.mrf.mxu3 }
  0xb1   : > { %610 = vst.msk [vmem:[%s945_s7 + $0x48] sm:$0xff] %vm600_vm3, %v577_v50  ;;  %v432_v53 = vadd.f32 %v934_v25, %v431_v51  ;;  %v452_v54 = vadd.f32 %v934_v25, %v451_v52  ;;  %v394_v55 = vpop.f32.mrf.mxu0  ;;  %v414_v56 = vpop.f32.mrf.mxu1 }
  0xb2   : > { %v395_v57 = vadd.f32 %v934_v25, %v394_v55  ;;  %v415_v58 = vadd.f32 %v934_v25, %v414_v56 }
  0xb3   : > { %vm489_vm0 = vcmp.lt.f32.partialorder %v432_v53, 0.0  ;;  %v553_v59 = vmul.f32 0.01, %v432_v53  ;;  %vm497_vm1 = vcmp.lt.f32.partialorder %v452_v54, 0.0  ;;  %v561_v60 = vmul.f32 0.01, %v452_v54 }
  0xb4   : > { %vm521_vm4 = vmand %vm471_vm2, %vm489_vm0  ;;  %vm474_vm5 = vcmp.lt.f32.partialorder %v395_v57, 0.0  ;;  %v538_v61 = vmul.f32 0.01, %v395_v57  ;;  %vm482_vm6 = vcmp.lt.f32.partialorder %v415_v58, 0.0  ;;  %v546_v62 = vmul.f32 0.01, %v415_v58 }
  0xb5   : > { %v585_v63 = vsel %vm521_vm4, %v553_v59, %v432_v53  ;;  %vm529_vm7 = vmand %vm471_vm2, %vm497_vm1 }
  0xb6   : > { %618 = vst.msk [vmem:[%s945_s7 + $0x88] sm:$0xff] %vm600_vm3, %v585_v63  ;;  %v593_v0 = vsel %vm529_vm7, %v561_v60, %v452_v54  ;;  %vm506_vm8 = vmand %vm471_vm2, %vm474_vm5 }
  0xb7   : > { %626 = vst.msk [vmem:[%s945_s7 + $0xc8] sm:$0xff] %vm600_vm3, %v593_v0  ;;  %v570_v1 = vsel %vm506_vm8, %v538_v61, %v395_v57  ;;  %vm514_vm9 = vmand %vm471_vm2, %vm482_vm6 }
  0xb8   : > { %603 = vst.msk [vmem:[%s945_s7 + $0x10] sm:$0xff] %vm600_vm3, %v570_v1  ;;  %v578_v2 = vsel %vm514_vm9, %v546_v62, %v415_v58  ;;  %v434_v3 = vpop.f32.mrf.mxu2  ;;  %v454_v4 = vpop.f32.mrf.mxu3 }
  0xb9   : > { %611 = vst.msk [vmem:[%s945_s7 + $0x50] sm:$0xff] %vm600_vm3, %v578_v2  ;;  %v435_v5 = vadd.f32 %v934_v25, %v434_v3  ;;  %v455_v6 = vadd.f32 %v934_v25, %v454_v4  ;;  %v396_v7 = vpop.f32.mrf.mxu0  ;;  %v416_v8 = vpop.f32.mrf.mxu1 }
  0xba   : > { %v397_v9 = vadd.f32 %v934_v25, %v396_v7  ;;  %v417_v10 = vadd.f32 %v934_v25, %v416_v8 }
  0xbb   : > { %vm490_vm10 = vcmp.lt.f32.partialorder %v435_v5, 0.0  ;;  %v554_v11 = vmul.f32 0.01, %v435_v5  ;;  %vm498_vm11 = vcmp.lt.f32.partialorder %v455_v6, 0.0  ;;  %v562_v12 = vmul.f32 0.01, %v455_v6 }
  0xbc   : > { %vm522_vm12 = vmand %vm471_vm2, %vm490_vm10  ;;  %vm475_vm13 = vcmp.lt.f32.partialorder %v397_v9, 0.0  ;;  %v539_v13 = vmul.f32 0.01, %v397_v9  ;;  %vm483_vm14 = vcmp.lt.f32.partialorder %v417_v10, 0.0  ;;  %v547_v14 = vmul.f32 0.01, %v417_v10 }
  0xbd   : > { %v586_v15 = vsel %vm522_vm12, %v554_v11, %v435_v5  ;;  %vm530_vm15 = vmand %vm471_vm2, %vm498_vm11 }
  0xbe   : > { %619 = vst.msk [vmem:[%s945_s7 + $0x90] sm:$0xff] %vm600_vm3, %v586_v15  ;;  %v594_v16 = vsel %vm530_vm15, %v562_v12, %v455_v6  ;;  %vm507_vm0 = vmand %vm471_vm2, %vm475_vm13 }
  0xbf   : > { %627 = vst.msk [vmem:[%s945_s7 + $0xd0] sm:$0xff] %vm600_vm3, %v594_v16  ;;  %v571_v17 = vsel %vm507_vm0, %v539_v13, %v397_v9  ;;  %vm515_vm1 = vmand %vm471_vm2, %vm483_vm14 }
  0xc0   : > { %604 = vst.msk [vmem:[%s945_s7 + $0x18] sm:$0xff] %vm600_vm3, %v571_v17  ;;  %v579_v18 = vsel %vm515_vm1, %v547_v14, %v417_v10  ;;  %v436_v19 = vpop.f32.mrf.mxu2  ;;  %v456_v20 = vpop.f32.mrf.mxu3 }
  0xc1   : > { %612 = vst.msk [vmem:[%s945_s7 + $0x58] sm:$0xff] %vm600_vm3, %v579_v18  ;;  %v437_v21 = vadd.f32 %v934_v25, %v436_v19  ;;  %v457_v22 = vadd.f32 %v934_v25, %v456_v20  ;;  %v399_v23 = vpop.f32.mrf.mxu0  ;;  %v419_v24 = vpop.f32.mrf.mxu1 }
  0xc2   : > { %v400_v27 = vadd.f32 %v934_v25, %v399_v23  ;;  %v420_v28 = vadd.f32 %v934_v25, %v419_v24 }
  0xc3   : > { %vm491_vm4 = vcmp.lt.f32.partialorder %v437_v21, 0.0  ;;  %v555_v29 = vmul.f32 0.01, %v437_v21  ;;  %vm499_vm5 = vcmp.lt.f32.partialorder %v457_v22, 0.0  ;;  %v563_v30 = vmul.f32 0.01, %v457_v22 }
  0xc4   : > { %vm523_vm6 = vmand %vm471_vm2, %vm491_vm4  ;;  %vm476_vm7 = vcmp.lt.f32.partialorder %v400_v27, 0.0  ;;  %v540_v31 = vmul.f32 0.01, %v400_v27  ;;  %vm484_vm8 = vcmp.lt.f32.partialorder %v420_v28, 0.0  ;;  %v548_v32 = vmul.f32 0.01, %v420_v28 }
  0xc5   : > { %v587_v33 = vsel %vm523_vm6, %v555_v29, %v437_v21  ;;  %vm531_vm9 = vmand %vm471_vm2, %vm499_vm5 }
  0xc6   : > { %620 = vst.msk [vmem:[%s945_s7 + $0x98] sm:$0xff] %vm600_vm3, %v587_v33  ;;  %v595_v34 = vsel %vm531_vm9, %v563_v30, %v457_v22  ;;  %vm508_vm10 = vmand %vm471_vm2, %vm476_vm7 }
  0xc7   : > { %628 = vst.msk [vmem:[%s945_s7 + $0xd8] sm:$0xff] %vm600_vm3, %v595_v34  ;;  %v572_v35 = vsel %vm508_vm10, %v540_v31, %v400_v27  ;;  %vm516_vm11 = vmand %vm471_vm2, %vm484_vm8 }
  0xc8   : > { %605 = vst.msk [vmem:[%s945_s7 + $0x20] sm:$0xff] %vm600_vm3, %v572_v35  ;;  %v580_v36 = vsel %vm516_vm11, %v548_v32, %v420_v28  ;;  %v439_v37 = vpop.f32.mrf.mxu2  ;;  %v459_v38 = vpop.f32.mrf.mxu3 }
  0xc9   : > { %613 = vst.msk [vmem:[%s945_s7 + $0x60] sm:$0xff] %vm600_vm3, %v580_v36  ;;  %v440_v39 = vadd.f32 %v934_v25, %v439_v37  ;;  %v460_v40 = vadd.f32 %v934_v25, %v459_v38  ;;  %v401_v41 = vpop.f32.mrf.mxu0  ;;  %v421_v42 = vpop.f32.mrf.mxu1 }
  0xca   : > { %v402_v43 = vadd.f32 %v934_v25, %v401_v41  ;;  %v422_v44 = vadd.f32 %v934_v25, %v421_v42 }
  0xcb   : > { %vm492_vm12 = vcmp.lt.f32.partialorder %v440_v39, 0.0  ;;  %v556_v45 = vmul.f32 0.01, %v440_v39  ;;  %vm500_vm13 = vcmp.lt.f32.partialorder %v460_v40, 0.0  ;;  %v564_v46 = vmul.f32 0.01, %v460_v40 }
  0xcc   : > { %vm524_vm14 = vmand %vm471_vm2, %vm492_vm12  ;;  %vm477_vm15 = vcmp.lt.f32.partialorder %v402_v43, 0.0  ;;  %v541_v47 = vmul.f32 0.01, %v402_v43  ;;  %vm485_vm0 = vcmp.lt.f32.partialorder %v422_v44, 0.0  ;;  %v549_v48 = vmul.f32 0.01, %v422_v44 }
  0xcd   : > { %v588_v49 = vsel %vm524_vm14, %v556_v45, %v440_v39  ;;  %vm532_vm1 = vmand %vm471_vm2, %vm500_vm13 }
  0xce   : > { %621 = vst.msk [vmem:[%s945_s7 + $0xa0] sm:$0xff] %vm600_vm3, %v588_v49  ;;  %v596_v50 = vsel %vm532_vm1, %v564_v46, %v460_v40  ;;  %vm509_vm4 = vmand %vm471_vm2, %vm477_vm15 }
  0xcf   : > { %629 = vst.msk [vmem:[%s945_s7 + $0xe0] sm:$0xff] %vm600_vm3, %v596_v50  ;;  %v573_v51 = vsel %vm509_vm4, %v541_v47, %v402_v43  ;;  %vm517_vm5 = vmand %vm471_vm2, %vm485_vm0 }
  0xd0   : > { %606 = vst.msk [vmem:[%s945_s7 + $0x28] sm:$0xff] %vm600_vm3, %v573_v51  ;;  %v581_v52 = vsel %vm517_vm5, %v549_v48, %v422_v44  ;;  %v441_v53 = vpop.f32.mrf.mxu2  ;;  %v461_v54 = vpop.f32.mrf.mxu3 }
  0xd1   : > { %614 = vst.msk [vmem:[%s945_s7 + $0x68] sm:$0xff] %vm600_vm3, %v581_v52  ;;  %v442_v55 = vadd.f32 %v934_v25, %v441_v53  ;;  %v462_v56 = vadd.f32 %v934_v25, %v461_v54  ;;  %v404_v57 = vpop.f32.mrf.mxu0  ;;  %v424_v58 = vpop.f32.mrf.mxu1 }
  0xd2   : > { %v405_v59 = vadd.f32 %v934_v25, %v404_v57  ;;  %v425_v60 = vadd.f32 %v934_v25, %v424_v58 }
  0xd3   : > { %vm493_vm6 = vcmp.lt.f32.partialorder %v442_v55, 0.0  ;;  %v557_v61 = vmul.f32 0.01, %v442_v55  ;;  %vm501_vm7 = vcmp.lt.f32.partialorder %v462_v56, 0.0  ;;  %v565_v62 = vmul.f32 0.01, %v462_v56 }
  0xd4   : > { %vm525_vm8 = vmand %vm471_vm2, %vm493_vm6  ;;  %vm478_vm9 = vcmp.lt.f32.partialorder %v405_v59, 0.0  ;;  %v542_v63 = vmul.f32 0.01, %v405_v59  ;;  %vm486_vm10 = vcmp.lt.f32.partialorder %v425_v60, 0.0  ;;  %v550_v0 = vmul.f32 0.01, %v425_v60 }
  0xd5   : > { %v589_v1 = vsel %vm525_vm8, %v557_v61, %v442_v55  ;;  %vm533_vm11 = vmand %vm471_vm2, %vm501_vm7 }
  0xd6   : > { %622 = vst.msk [vmem:[%s945_s7 + $0xa8] sm:$0xff] %vm600_vm3, %v589_v1  ;;  %v597_v2 = vsel %vm533_vm11, %v565_v62, %v462_v56  ;;  %vm510_vm12 = vmand %vm471_vm2, %vm478_vm9 }
  0xd7   : > { %630 = vst.msk [vmem:[%s945_s7 + $0xe8] sm:$0xff] %vm600_vm3, %v597_v2  ;;  %v574_v3 = vsel %vm510_vm12, %v542_v63, %v405_v59  ;;  %vm518_vm13 = vmand %vm471_vm2, %vm486_vm10 }
  0xd8   : > { %607 = vst.msk [vmem:[%s945_s7 + $0x30] sm:$0xff] %vm600_vm3, %v574_v3  ;;  %v582_v4 = vsel %vm518_vm13, %v550_v0, %v425_v60  ;;  %v444_v5 = vpop.f32.mrf.mxu2  ;;  %v464_v6 = vpop.f32.mrf.mxu3 }
  0xd9   : > { %615 = vst.msk [vmem:[%s945_s7 + $0x70] sm:$0xff] %vm600_vm3, %v582_v4  ;;  %v445_v7 = vadd.f32 %v934_v25, %v444_v5  ;;  %v465_v8 = vadd.f32 %v934_v25, %v464_v6  ;;  %v406_v9 = vpop.f32.mrf.mxu0  ;;  %v426_v10 = vpop.f32.mrf.mxu1 }
  0xda   : > { %v407_v11 = vadd.f32 %v934_v25, %v406_v9  ;;  %v427_v12 = vadd.f32 %v934_v25, %v426_v10 }
  0xdb   : > { %vm494_vm14 = vcmp.lt.f32.partialorder %v445_v7, 0.0  ;;  %v558_v13 = vmul.f32 0.01, %v445_v7  ;;  %vm502_vm15 = vcmp.lt.f32.partialorder %v465_v8, 0.0  ;;  %v566_v14 = vmul.f32 0.01, %v465_v8 }
  0xdc   : > { %vm526_vm0 = vmand %vm471_vm2, %vm494_vm14  ;;  %vm479_vm1 = vcmp.lt.f32.partialorder %v407_v11, 0.0  ;;  %v543_v15 = vmul.f32 0.01, %v407_v11  ;;  %vm487_vm4 = vcmp.lt.f32.partialorder %v427_v12, 0.0  ;;  %v551_v16 = vmul.f32 0.01, %v427_v12 }
  0xdd   : > { %v590_v17 = vsel %vm526_vm0, %v558_v13, %v445_v7  ;;  %vm534_vm5 = vmand %vm471_vm2, %vm502_vm15 }
  0xde   : > { %623 = vst.msk [vmem:[%s945_s7 + $0xb0] sm:$0xff] %vm600_vm3, %v590_v17  ;;  %v598_v18 = vsel %vm534_vm5, %v566_v14, %v465_v8  ;;  %vm511_vm6 = vmand %vm471_vm2, %vm479_vm1 }
  0xdf   : > { %631 = vst.msk [vmem:[%s945_s7 + $0xf0] sm:$0xff] %vm600_vm3, %v598_v18  ;;  %v575_v19 = vsel %vm511_vm6, %v543_v15, %v407_v11  ;;  %vm519_vm7 = vmand %vm471_vm2, %vm487_vm4 }
  0xe0   : > { %608 = vst.msk [vmem:[%s945_s7 + $0x38] sm:$0xff] %vm600_vm3, %v575_v19  ;;  %v583_v20 = vsel %vm519_vm7, %v551_v16, %v427_v12  ;;  %v446_v21 = vpop.f32.mrf.mxu2  ;;  %v466_v22 = vpop.f32.mrf.mxu3 }
  0xe1   : > { %616 = vst.msk [vmem:[%s945_s7 + $0x78] sm:$0xff] %vm600_vm3, %v583_v20  ;;  %v447_v23 = vadd.f32 %v934_v25, %v446_v21  ;;  %v467_v24 = vadd.f32 %v934_v25, %v466_v22 }
  0xe3   : > { %vm495_vm8 = vcmp.lt.f32.partialorder %v447_v23, 0.0  ;;  %v559_v27 = vmul.f32 0.01, %v447_v23  ;;  %vm503_vm9 = vcmp.lt.f32.partialorder %v467_v24, 0.0  ;;  %v567_v28 = vmul.f32 0.01, %v467_v24 }
  0xe4   : > { %vm527_vm10 = vmand %vm471_vm2, %vm495_vm8 }
  0xe5   : > { %v591_v29 = vsel %vm527_vm10, %v559_v27, %v447_v23  ;;  %vm535_vm11 = vmand %vm471_vm2, %vm503_vm9 }
  0xe6   : > { %624 = vst.msk [vmem:[%s945_s7 + $0xb8] sm:$0xff] %vm600_vm3, %v591_v29  ;;  %v599_v30 = vsel %vm535_vm11, %v567_v28, %v467_v24 }
  0xe7   : > { %632 = vst.msk [vmem:[%s945_s7 + $0xf8] sm:$0xff] %vm600_vm3, %v599_v30 }
  0xe8 PF: > { %s13_s12 = sadd.s32 1, %s846_s12  }
  0xe9   : > { %p10_p4 = scmp.ge.s32.totalorder %s13_s12, 4  }
  0xeb   :  { %12 = sbr.rel (!%p10_p4) target bundleno = 1 (0x1), region = 62 }

// kernel: _lambda_.3
= control target key start
LH: loop header
LB: loop body
LE: loop exit
PB: predicated region body
PF: predicated region fallthrough
CT: control target
= control target key end

     0   :  { %s965_s15 = smov 0   ;;  %s1175_s0 = inlined_call_operand.vmem [shape: bf16[512,72], index: 0, kind: input, shape index: {}]   ;;  %s1176_s1 = inlined_call_operand.vmem [shape: bf16[72,8], index: 1, kind: input, shape index: {}]   ;;  %s1177_s2 = inlined_call_operand.vmem [shape: f32[1,8], index: 2, kind: input, shape index: {}]   ;;  %s1178_s3 = inlined_call_operand.vmem [shape: f32[512,8], index: 3, kind: input, shape index: {}]   ;;  %s1179_s4 = inlined_call_operand.vmem [shape: f32[512,8], index: 4, kind: output, shape index: {}]  }
   0x1 LB: > { %s779_s16 = sadd.s32 4294967295, %s938_s15   ;;  %p783_p0 = scmp.ge.s32.totalorder %s938_s15, 1  ;;  %s938_s15 = sphi %s965_s15, %s14_s15  }
   0x2   : > { %p174_p1 = scmp.lt.s32.totalorder %s938_s15, 3 }
   0x4   : > { %p175_p2 = pnand %p783_p0, %p174_p1 }
   0x5   : > { %s784_s19 = sshll.u32 (!%p175_p2), %s779_s16, 5 }
   0x6   : > { %178 = sbr.rel (%p175_p2) target bundleno = 234 (0xea), region = 36  ;;  %p206_p3 = scmp.lt.s32.totalorder (!%p175_p2), %s784_s19, 63 }
   0xb   : > { %v264_v0 = vld [vmem:[%s1176_s1 + $0x20] sm:$0xf]  ;;  %vm425_vm0 = vcmask 1043456   ;;  %v907_v4 = vld [vmem:[%s1176_s1 + $0x18] sm:$0xff]  ;;  %v906_v5 = vld [vmem:[%s1176_s1 + $0x10] sm:$0xff]  ;;  %s1181_s19 = smov (!%p206_p3, %s784_s19), 63 }
   0xc   : > { %v366_v1 = vunpack.c.l.b16 %v264_v0  ;;  %v905_v6 = vld [vmem:[%s1176_s1 + $0x8] sm:$0xff]  ;;  %s785_s26 = sshll.u32 %s1181_s19, 2  ;;  %v904_v7 = vld [vmem:[%s1176_s1] sm:$0xff]  ;;  %vm376_vm1 = vcmask 588800   ;;  %s787_s6 = sshll.u32 %s1181_s19, 3  ;;  %vm678_vm2 = vcmask 64512  }
   0xd   : > { %s994_s5 = scalar_lea.vmem %s1175_s0, %s785_s26  ;;  %s1032_s9 = scalar_lea.vmem %s1178_s3, %s787_s6  ;;  %v1037_v24 = vld [vmem:[%s1177_s2] ss:$0 sm:$0xff] }
   0xe   : > { %v371_v2 = vpack.c.b16 %v366_v1, %v366_v1  ;;  %v888_v8 = vld [vmem:[%s994_s5] sm:$0xff]  ;;  %v889_v12 = vld [vmem:[%s994_s5 + $0x8] sm:$0xff]  ;;  %v890_v16 = vld [vmem:[%s994_s5 + $0x10] sm:$0xff]  ;;  %s1046_s14 = scalar_lea.vmem %s1179_s4, %s787_s6 }
   0xf   : > { %v892_v9 = vld [vmem:[%s994_s5 + $0x20] sm:$0xff]  ;;  %v893_v13 = vld [vmem:[%s994_s5 + $0x28] sm:$0xff]  ;;  %v894_v17 = vld [vmem:[%s994_s5 + $0x30] sm:$0xff] }
  0x10   : > { %v427_v3 = vsel %vm425_vm0, %v371_v2, 0  ;;  %v896_v10 = vld [vmem:[%s994_s5 + $0x40] sm:$0xff]  ;;  %v897_v14 = vld [vmem:[%s994_s5 + $0x48] sm:$0xff]  ;;  %v898_v18 = vld [vmem:[%s994_s5 + $0x50] sm:$0xff] }
  0x11   : > { %432 = vmatpush.bf16.msra.mxu0 %v427_v3  ;;  %908 = vmatpush.bf16.msra.mxu1 %v427_v3  ;;  %v900_v11 = vld [vmem:[%s994_s5 + $0x60] sm:$0xff]  ;;  %v901_v15 = vld [vmem:[%s994_s5 + $0x68] sm:$0xff]  ;;  %v902_v19 = vld [vmem:[%s994_s5 + $0x70] sm:$0xff] }
  0x12   : > { %909 = vmatpush.bf16.msra.mxu2 %v427_v3  ;;  %910 = vmatpush.bf16.msra.mxu3 %v427_v3  ;;  %v891_v20 = vld [vmem:[%s994_s5 + $0x18] sm:$0xff]  ;;  %v518_v26 = vld [vmem:[%s1032_s9] sm:$0xff]  ;;  %v519_v44 = vld [vmem:[%s1032_s9 + $0x8] sm:$0xff] }
  0x13   : > { %v895_v21 = vld [vmem:[%s994_s5 + $0x38] sm:$0xff]  ;;  %v526_v28 = vld [vmem:[%s1032_s9 + $0x40] sm:$0xff]  ;;  %v527_v46 = vld [vmem:[%s1032_s9 + $0x48] sm:$0xff] }
  0x14   : > { %v899_v22 = vld [vmem:[%s994_s5 + $0x58] sm:$0xff]  ;;  %v534_v38 = vld [vmem:[%s1032_s9 + $0x80] sm:$0xff]  ;;  %v535_v62 = vld [vmem:[%s1032_s9 + $0x88] sm:$0xff] }
  0x15   : > { %433 = vmatpush.bf16.msra.mxu0 %v907_v4  ;;  %911 = vmatpush.bf16.msra.mxu1 %v907_v4  ;;  %v903_v23 = vld [vmem:[%s994_s5 + $0x78] sm:$0xff]  ;;  %v542_v40 = vld [vmem:[%s1032_s9 + $0xc0] sm:$0xff]  ;;  %v543_v0 = vld [vmem:[%s1032_s9 + $0xc8] sm:$0xff] }
  0x16   : > { %912 = vmatpush.bf16.msra.mxu2 %v907_v4  ;;  %913 = vmatpush.bf16.msra.mxu3 %v907_v4  ;;  %v520_v4 = vld [vmem:[%s1032_s9 + $0x10] sm:$0xff] }
  0x19   : > { %434 = vmatpush.bf16.msra.mxu0 %v906_v5  ;;  %914 = vmatpush.bf16.msra.mxu1 %v906_v5 }
  0x1a   : > { %915 = vmatpush.bf16.msra.mxu2 %v906_v5  ;;  %916 = vmatpush.bf16.msra.mxu3 %v906_v5 }
  0x1d   : > { %435 = vmatpush.bf16.msra.mxu0 %v905_v6  ;;  %917 = vmatpush.bf16.msra.mxu1 %v905_v6 }
  0x1e   : > { %918 = vmatpush.bf16.msra.mxu2 %v905_v6  ;;  %919 = vmatpush.bf16.msra.mxu3 %v905_v6  ;;  %v528_v6 = vld [vmem:[%s1032_s9 + $0x50] sm:$0xff] }
  0x21   : > { %436 = vmatpush.bf16.msra.mxu0 %v904_v7  ;;  %920 = vmatpush.bf16.msra.mxu1 %v904_v7 }
  0x22   : > { %921 = vmatpush.bf16.msra.mxu2 %v904_v7  ;;  %922 = vmatpush.bf16.msra.mxu3 %v904_v7 }
  0x24   : > { %870 = vmatmul.msk.bf16.vlgmr.msra.gmra.mxu0 %vm376_vm1, %v888_v8  ;;  %874 = vmatmul.msk.bf16.vlgmr.msra.gmra.mxu1 %vm376_vm1, %v892_v9 }
  0x25   : > { %878 = vmatmul.msk.bf16.vlgmr.msra.gmra.mxu2 %vm376_vm1, %v896_v10  ;;  %882 = vmatmul.msk.bf16.vlgmr.msra.gmra.mxu3 %vm376_vm1, %v900_v11 }
  0x34   : > { %871 = vmatmul.msk.bf16.gmra.mxu0 %vm376_vm1, %v889_v12  ;;  %875 = vmatmul.msk.bf16.gmra.mxu1 %vm376_vm1, %v893_v13 }
  0x35   : > { %879 = vmatmul.msk.bf16.gmra.mxu2 %vm376_vm1, %v897_v14  ;;  %883 = vmatmul.msk.bf16.gmra.mxu3 %vm376_vm1, %v901_v15 }
  0x44   : > { %872 = vmatmul.msk.bf16.gmra.mxu0 %vm376_vm1, %v890_v16  ;;  %876 = vmatmul.msk.bf16.gmra.mxu1 %vm376_vm1, %v894_v17 }
  0x45   : > { %880 = vmatmul.msk.bf16.gmra.mxu2 %vm376_vm1, %v898_v18  ;;  %884 = vmatmul.msk.bf16.gmra.mxu3 %vm376_vm1, %v902_v19 }
  0x54   : > { %873 = vmatmul.msk.bf16.gmra.mxu0 %vm376_vm1, %v891_v20  ;;  %877 = vmatmul.msk.bf16.gmra.mxu1 %vm376_vm1, %v895_v21 }
  0x55   : > { %881 = vmatmul.msk.bf16.gmra.mxu2 %vm376_vm1, %v899_v22  ;;  %885 = vmatmul.msk.bf16.gmra.mxu3 %vm376_vm1, %v903_v23  ;;  %v536_v22 = vld [vmem:[%s1032_s9 + $0x90] sm:$0xff] }
  0xa1   : > { %v438_v25 = vpop.f32.mrf.mxu0  ;;  %v458_v27 = vpop.f32.mrf.mxu1 }
  0xa2   : > { %v439_v29 = vadd.f32 %v1037_v24, %v438_v25  ;;  %v459_v30 = vadd.f32 %v1037_v24, %v458_v27  ;;  %v544_v25 = vld [vmem:[%s1032_s9 + $0xd0] sm:$0xff] }
  0xa4   : > { %v550_v31 = vadd.f32 %v518_v26, %v439_v29  ;;  %v558_v32 = vadd.f32 %v526_v28, %v459_v30  ;;  %v521_v29 = vld [vmem:[%s1032_s9 + $0x18] sm:$0xff] }
  0xa6   : > { %vm582_vm3 = vcmp.ge.f32.partialorder %v550_v31, 0.0  ;;  %v614_v33 = vmul.f32 0.01, %v550_v31  ;;  %vm590_vm4 = vcmp.ge.f32.partialorder %v558_v32, 0.0  ;;  %v622_v34 = vmul.f32 0.01, %v558_v32 }
  0xa8   : > { %v646_v35 = vsel %vm582_vm3, %v550_v31, %v614_v33  ;;  %v654_v36 = vsel %vm590_vm4, %v558_v32, %v622_v34  ;;  %v478_v37 = vpop.f32.mrf.mxu2  ;;  %v498_v39 = vpop.f32.mrf.mxu3  ;;  %v529_v31 = vld [vmem:[%s1032_s9 + $0x58] sm:$0xff] }
  0xa9   : > { %679 = vst.msk [vmem:[%s1046_s14] sm:$0xff] %vm678_vm2, %v646_v35  ;;  %v479_v41 = vadd.f32 %v1037_v24, %v478_v37  ;;  %v499_v42 = vadd.f32 %v1037_v24, %v498_v39  ;;  %v440_v43 = vpop.f32.mrf.mxu0  ;;  %v460_v45 = vpop.f32.mrf.mxu1 }
  0xaa   : > { %687 = vst.msk [vmem:[%s1046_s14 + $0x40] sm:$0xff] %vm678_vm2, %v654_v36  ;;  %v441_v47 = vadd.f32 %v1037_v24, %v440_v43  ;;  %v461_v48 = vadd.f32 %v1037_v24, %v460_v45 }
  0xab   : > { %v566_v49 = vadd.f32 %v534_v38, %v479_v41  ;;  %v574_v50 = vadd.f32 %v542_v40, %v499_v42 }
  0xac   : > { %v551_v51 = vadd.f32 %v519_v44, %v441_v47  ;;  %v559_v52 = vadd.f32 %v527_v46, %v461_v48  ;;  %v537_v47 = vld [vmem:[%s1032_s9 + $0x98] sm:$0xff] }
  0xad   : > { %vm598_vm5 = vcmp.ge.f32.partialorder %v566_v49, 0.0  ;;  %v630_v53 = vmul.f32 0.01, %v566_v49  ;;  %vm606_vm6 = vcmp.ge.f32.partialorder %v574_v50, 0.0  ;;  %v638_v54 = vmul.f32 0.01, %v574_v50 }
  0xae   : > { %vm583_vm7 = vcmp.ge.f32.partialorder %v551_v51, 0.0  ;;  %v615_v55 = vmul.f32 0.01, %v551_v51  ;;  %vm591_vm8 = vcmp.ge.f32.partialorder %v559_v52, 0.0  ;;  %v623_v56 = vmul.f32 0.01, %v559_v52 }
  0xaf   : > { %v662_v57 = vsel %vm598_vm5, %v566_v49, %v630_v53  ;;  %v670_v58 = vsel %vm606_vm6, %v574_v50, %v638_v54  ;;  %v545_v49 = vld [vmem:[%s1032_s9 + $0xd8] sm:$0xff]  ;;  %v522_v53 = vld [vmem:[%s1032_s9 + $0x20] sm:$0xff] }
  0xb0   : > { %695 = vst.msk [vmem:[%s1046_s14 + $0x80] sm:$0xff] %vm678_vm2, %v662_v57  ;;  %v647_v59 = vsel %vm583_vm7, %v551_v51, %v615_v55  ;;  %v655_v60 = vsel %vm591_vm8, %v559_v52, %v623_v56  ;;  %v480_v61 = vpop.f32.mrf.mxu2  ;;  %v500_v63 = vpop.f32.mrf.mxu3  ;;  %v530_v55 = vld [vmem:[%s1032_s9 + $0x60] sm:$0xff] }
  0xb1   : > { %703 = vst.msk [vmem:[%s1046_s14 + $0xc0] sm:$0xff] %vm678_vm2, %v670_v58  ;;  %v481_v1 = vadd.f32 %v1037_v24, %v480_v61  ;;  %v501_v2 = vadd.f32 %v1037_v24, %v500_v63  ;;  %v443_v3 = vpop.f32.mrf.mxu0  ;;  %v463_v5 = vpop.f32.mrf.mxu1 }
  0xb2   : > { %680 = vst.msk [vmem:[%s1046_s14 + $0x8] sm:$0xff] %vm678_vm2, %v647_v59  ;;  %v444_v7 = vadd.f32 %v1037_v24, %v443_v3  ;;  %v464_v8 = vadd.f32 %v1037_v24, %v463_v5 }
  0xb3   : > { %688 = vst.msk [vmem:[%s1046_s14 + $0x48] sm:$0xff] %vm678_vm2, %v655_v60  ;;  %v567_v9 = vadd.f32 %v535_v62, %v481_v1  ;;  %v575_v10 = vadd.f32 %v543_v0, %v501_v2 }
  0xb4   : > { %v552_v11 = vadd.f32 %v520_v4, %v444_v7  ;;  %v560_v12 = vadd.f32 %v528_v6, %v464_v8  ;;  %v538_v7 = vld [vmem:[%s1032_s9 + $0xa0] sm:$0xff] }
  0xb5   : > { %vm599_vm9 = vcmp.ge.f32.partialorder %v567_v9, 0.0  ;;  %v631_v13 = vmul.f32 0.01, %v567_v9  ;;  %vm607_vm10 = vcmp.ge.f32.partialorder %v575_v10, 0.0  ;;  %v639_v14 = vmul.f32 0.01, %v575_v10 }
  0xb6   : > { %vm584_vm11 = vcmp.ge.f32.partialorder %v552_v11, 0.0  ;;  %v616_v15 = vmul.f32 0.01, %v552_v11  ;;  %vm592_vm12 = vcmp.ge.f32.partialorder %v560_v12, 0.0  ;;  %v624_v16 = vmul.f32 0.01, %v560_v12 }
  0xb7   : > { %v663_v17 = vsel %vm599_vm9, %v567_v9, %v631_v13  ;;  %v671_v18 = vsel %vm607_vm10, %v575_v10, %v639_v14  ;;  %v546_v9 = vld [vmem:[%s1032_s9 + $0xe0] sm:$0xff]  ;;  %v523_v13 = vld [vmem:[%s1032_s9 + $0x28] sm:$0xff] }
  0xb8   : > { %696 = vst.msk [vmem:[%s1046_s14 + $0x88] sm:$0xff] %vm678_vm2, %v663_v17  ;;  %v648_v19 = vsel %vm584_vm11, %v552_v11, %v616_v15  ;;  %v656_v20 = vsel %vm592_vm12, %v560_v12, %v624_v16  ;;  %v483_v21 = vpop.f32.mrf.mxu2  ;;  %v503_v23 = vpop.f32.mrf.mxu3  ;;  %v531_v15 = vld [vmem:[%s1032_s9 + $0x68] sm:$0xff] }
  0xb9   : > { %704 = vst.msk [vmem:[%s1046_s14 + $0xc8] sm:$0xff] %vm678_vm2, %v671_v18  ;;  %v484_v26 = vadd.f32 %v1037_v24, %v483_v21  ;;  %v504_v27 = vadd.f32 %v1037_v24, %v503_v23  ;;  %v445_v28 = vpop.f32.mrf.mxu0  ;;  %v465_v30 = vpop.f32.mrf.mxu1 }
  0xba   : > { %681 = vst.msk [vmem:[%s1046_s14 + $0x10] sm:$0xff] %vm678_vm2, %v648_v19  ;;  %v446_v32 = vadd.f32 %v1037_v24, %v445_v28  ;;  %v466_v33 = vadd.f32 %v1037_v24, %v465_v30 }
  0xbb   : > { %689 = vst.msk [vmem:[%s1046_s14 + $0x50] sm:$0xff] %vm678_vm2, %v656_v20  ;;  %v568_v34 = vadd.f32 %v536_v22, %v484_v26  ;;  %v576_v35 = vadd.f32 %v544_v25, %v504_v27 }
  0xbc   : > { %v553_v36 = vadd.f32 %v521_v29, %v446_v32  ;;  %v561_v37 = vadd.f32 %v529_v31, %v466_v33  ;;  %v539_v32 = vld [vmem:[%s1032_s9 + $0xa8] sm:$0xff] }
  0xbd   : > { %vm600_vm13 = vcmp.ge.f32.partialorder %v568_v34, 0.0  ;;  %v632_v38 = vmul.f32 0.01, %v568_v34  ;;  %vm608_vm14 = vcmp.ge.f32.partialorder %v576_v35, 0.0  ;;  %v640_v39 = vmul.f32 0.01, %v576_v35 }
  0xbe   : > { %vm585_vm15 = vcmp.ge.f32.partialorder %v553_v36, 0.0  ;;  %v617_v40 = vmul.f32 0.01, %v553_v36  ;;  %vm593_vm0 = vcmp.ge.f32.partialorder %v561_v37, 0.0  ;;  %v625_v41 = vmul.f32 0.01, %v561_v37 }
  0xbf   : > { %v664_v42 = vsel %vm600_vm13, %v568_v34, %v632_v38  ;;  %v672_v43 = vsel %vm608_vm14, %v576_v35, %v640_v39  ;;  %v547_v34 = vld [vmem:[%s1032_s9 + $0xe8] sm:$0xff]  ;;  %v524_v38 = vld [vmem:[%s1032_s9 + $0x30] sm:$0xff] }
  0xc0   : > { %697 = vst.msk [vmem:[%s1046_s14 + $0x90] sm:$0xff] %vm678_vm2, %v664_v42  ;;  %v649_v44 = vsel %vm585_vm15, %v553_v36, %v617_v40  ;;  %v657_v45 = vsel %vm593_vm0, %v561_v37, %v625_v41  ;;  %v485_v46 = vpop.f32.mrf.mxu2  ;;  %v505_v48 = vpop.f32.mrf.mxu3  ;;  %v532_v40 = vld [vmem:[%s1032_s9 + $0x70] sm:$0xff] }
  0xc1   : > { %705 = vst.msk [vmem:[%s1046_s14 + $0xd0] sm:$0xff] %vm678_vm2, %v672_v43  ;;  %v486_v50 = vadd.f32 %v1037_v24, %v485_v46  ;;  %v506_v51 = vadd.f32 %v1037_v24, %v505_v48  ;;  %v448_v52 = vpop.f32.mrf.mxu0  ;;  %v468_v54 = vpop.f32.mrf.mxu1 }
  0xc2   : > { %682 = vst.msk [vmem:[%s1046_s14 + $0x18] sm:$0xff] %vm678_vm2, %v649_v44  ;;  %v449_v56 = vadd.f32 %v1037_v24, %v448_v52  ;;  %v469_v57 = vadd.f32 %v1037_v24, %v468_v54 }
  0xc3   : > { %690 = vst.msk [vmem:[%s1046_s14 + $0x58] sm:$0xff] %vm678_vm2, %v657_v45  ;;  %v569_v58 = vadd.f32 %v537_v47, %v486_v50  ;;  %v577_v59 = vadd.f32 %v545_v49, %v506_v51 }
  0xc4   : > { %v554_v60 = vadd.f32 %v522_v53, %v449_v56  ;;  %v562_v61 = vadd.f32 %v530_v55, %v469_v57  ;;  %v540_v56 = vld [vmem:[%s1032_s9 + $0xb0] sm:$0xff] }
  0xc5   : > { %vm601_vm1 = vcmp.ge.f32.partialorder %v569_v58, 0.0  ;;  %v633_v62 = vmul.f32 0.01, %v569_v58  ;;  %vm609_vm3 = vcmp.ge.f32.partialorder %v577_v59, 0.0  ;;  %v641_v63 = vmul.f32 0.01, %v577_v59 }
  0xc6   : > { %vm586_vm4 = vcmp.ge.f32.partialorder %v554_v60, 0.0  ;;  %v618_v0 = vmul.f32 0.01, %v554_v60  ;;  %vm594_vm5 = vcmp.ge.f32.partialorder %v562_v61, 0.0  ;;  %v626_v1 = vmul.f32 0.01, %v562_v61 }
  0xc7   : > { %v665_v2 = vsel %vm601_vm1, %v569_v58, %v633_v62  ;;  %v673_v3 = vsel %vm609_vm3, %v577_v59, %v641_v63  ;;  %v548_v58 = vld [vmem:[%s1032_s9 + $0xf0] sm:$0xff]  ;;  %v525_v62 = vld [vmem:[%s1032_s9 + $0x38] sm:$0xff] }
  0xc8   : > { %698 = vst.msk [vmem:[%s1046_s14 + $0x98] sm:$0xff] %vm678_vm2, %v665_v2  ;;  %v650_v4 = vsel %vm586_vm4, %v554_v60, %v618_v0  ;;  %v658_v5 = vsel %vm594_vm5, %v562_v61, %v626_v1  ;;  %v488_v6 = vpop.f32.mrf.mxu2  ;;  %v508_v8 = vpop.f32.mrf.mxu3  ;;  %v533_v0 = vld [vmem:[%s1032_s9 + $0x78] sm:$0xff] }
  0xc9   : > { %706 = vst.msk [vmem:[%s1046_s14 + $0xd8] sm:$0xff] %vm678_vm2, %v673_v3  ;;  %v489_v10 = vadd.f32 %v1037_v24, %v488_v6  ;;  %v509_v11 = vadd.f32 %v1037_v24, %v508_v8  ;;  %v450_v12 = vpop.f32.mrf.mxu0  ;;  %v470_v14 = vpop.f32.mrf.mxu1 }
  0xca   : > { %683 = vst.msk [vmem:[%s1046_s14 + $0x20] sm:$0xff] %vm678_vm2, %v650_v4  ;;  %v451_v16 = vadd.f32 %v1037_v24, %v450_v12  ;;  %v471_v17 = vadd.f32 %v1037_v24, %v470_v14 }
  0xcb   : > { %691 = vst.msk [vmem:[%s1046_s14 + $0x60] sm:$0xff] %vm678_vm2, %v658_v5  ;;  %v570_v18 = vadd.f32 %v538_v7, %v489_v10  ;;  %v578_v19 = vadd.f32 %v546_v9, %v509_v11 }
  0xcc   : > { %v555_v20 = vadd.f32 %v523_v13, %v451_v16  ;;  %v563_v21 = vadd.f32 %v531_v15, %v471_v17  ;;  %v541_v16 = vld [vmem:[%s1032_s9 + $0xb8] sm:$0xff] }
  0xcd   : > { %vm602_vm6 = vcmp.ge.f32.partialorder %v570_v18, 0.0  ;;  %v634_v22 = vmul.f32 0.01, %v570_v18  ;;  %vm610_vm7 = vcmp.ge.f32.partialorder %v578_v19, 0.0  ;;  %v642_v23 = vmul.f32 0.01, %v578_v19 }
  0xce   : > { %vm587_vm8 = vcmp.ge.f32.partialorder %v555_v20, 0.0  ;;  %v619_v25 = vmul.f32 0.01, %v555_v20  ;;  %vm595_vm9 = vcmp.ge.f32.partialorder %v563_v21, 0.0  ;;  %v627_v26 = vmul.f32 0.01, %v563_v21 }
  0xcf   : > { %v666_v27 = vsel %vm602_vm6, %v570_v18, %v634_v22  ;;  %v674_v28 = vsel %vm610_vm7, %v578_v19, %v642_v23  ;;  %v549_v18 = vld [vmem:[%s1032_s9 + $0xf8] sm:$0xff] }
  0xd0   : > { %699 = vst.msk [vmem:[%s1046_s14 + $0xa0] sm:$0xff] %vm678_vm2, %v666_v27  ;;  %v651_v29 = vsel %vm587_vm8, %v555_v20, %v619_v25  ;;  %v659_v30 = vsel %vm595_vm9, %v563_v21, %v627_v26  ;;  %v490_v31 = vpop.f32.mrf.mxu2  ;;  %v510_v33 = vpop.f32.mrf.mxu3 }
  0xd1   : > { %707 = vst.msk [vmem:[%s1046_s14 + $0xe0] sm:$0xff] %vm678_vm2, %v674_v28  ;;  %v491_v35 = vadd.f32 %v1037_v24, %v490_v31  ;;  %v511_v36 = vadd.f32 %v1037_v24, %v510_v33  ;;  %v453_v37 = vpop.f32.mrf.mxu0  ;;  %v473_v39 = vpop.f32.mrf.mxu1 }
  0xd2   : > { %684 = vst.msk [vmem:[%s1046_s14 + $0x28] sm:$0xff] %vm678_vm2, %v651_v29  ;;  %v454_v41 = vadd.f32 %v1037_v24, %v453_v37  ;;  %v474_v42 = vadd.f32 %v1037_v24, %v473_v39 }
  0xd3   : > { %692 = vst.msk [vmem:[%s1046_s14 + $0x68] sm:$0xff] %vm678_vm2, %v659_v30  ;;  %v571_v43 = vadd.f32 %v539_v32, %v491_v35  ;;  %v579_v44 = vadd.f32 %v547_v34, %v511_v36 }
  0xd4   : > { %v556_v45 = vadd.f32 %v524_v38, %v454_v41  ;;  %v564_v46 = vadd.f32 %v532_v40, %v474_v42 }
  0xd5   : > { %vm603_vm10 = vcmp.ge.f32.partialorder %v571_v43, 0.0  ;;  %v635_v47 = vmul.f32 0.01, %v571_v43  ;;  %vm611_vm11 = vcmp.ge.f32.partialorder %v579_v44, 0.0  ;;  %v643_v48 = vmul.f32 0.01, %v579_v44 }
  0xd6   : > { %vm588_vm12 = vcmp.ge.f32.partialorder %v556_v45, 0.0  ;;  %v620_v49 = vmul.f32 0.01, %v556_v45  ;;  %vm596_vm13 = vcmp.ge.f32.partialorder %v564_v46, 0.0  ;;  %v628_v50 = vmul.f32 0.01, %v564_v46 }
  0xd7   : > { %v667_v51 = vsel %vm603_vm10, %v571_v43, %v635_v47  ;;  %v675_v52 = vsel %vm611_vm11, %v579_v44, %v643_v48 }
  0xd8   : > { %700 = vst.msk [vmem:[%s1046_s14 + $0xa8] sm:$0xff] %vm678_vm2, %v667_v51  ;;  %v652_v53 = vsel %vm588_vm12, %v556_v45, %v620_v49  ;;  %v660_v54 = vsel %vm596_vm13, %v564_v46, %v628_v50  ;;  %v493_v55 = vpop.f32.mrf.mxu2  ;;  %v513_v57 = vpop.f32.mrf.mxu3 }
  0xd9   : > { %708 = vst.msk [vmem:[%s1046_s14 + $0xe8] sm:$0xff] %vm678_vm2, %v675_v52  ;;  %v494_v59 = vadd.f32 %v1037_v24, %v493_v55  ;;  %v514_v60 = vadd.f32 %v1037_v24, %v513_v57  ;;  %v455_v61 = vpop.f32.mrf.mxu0  ;;  %v475_v63 = vpop.f32.mrf.mxu1 }
  0xda   : > { %685 = vst.msk [vmem:[%s1046_s14 + $0x30] sm:$0xff] %vm678_vm2, %v652_v53  ;;  %v456_v1 = vadd.f32 %v1037_v24, %v455_v61  ;;  %v476_v2 = vadd.f32 %v1037_v24, %v475_v63 }
  0xdb   : > { %693 = vst.msk [vmem:[%s1046_s14 + $0x70] sm:$0xff] %vm678_vm2, %v660_v54  ;;  %v572_v3 = vadd.f32 %v540_v56, %v494_v59  ;;  %v580_v4 = vadd.f32 %v548_v58, %v514_v60 }
  0xdc   : > { %v557_v5 = vadd.f32 %v525_v62, %v456_v1  ;;  %v565_v6 = vadd.f32 %v533_v0, %v476_v2 }
  0xdd   : > { %vm604_vm14 = vcmp.ge.f32.partialorder %v572_v3, 0.0  ;;  %v636_v7 = vmul.f32 0.01, %v572_v3  ;;  %vm612_vm15 = vcmp.ge.f32.partialorder %v580_v4, 0.0  ;;  %v644_v8 = vmul.f32 0.01, %v580_v4 }
  0xde   : > { %vm589_vm0 = vcmp.ge.f32.partialorder %v557_v5, 0.0  ;;  %v621_v9 = vmul.f32 0.01, %v557_v5  ;;  %vm597_vm1 = vcmp.ge.f32.partialorder %v565_v6, 0.0  ;;  %v629_v10 = vmul.f32 0.01, %v565_v6 }
  0xdf   : > { %v668_v11 = vsel %vm604_vm14, %v572_v3, %v636_v7  ;;  %v676_v12 = vsel %vm612_vm15, %v580_v4, %v644_v8 }
  0xe0   : > { %701 = vst.msk [vmem:[%s1046_s14 + $0xb0] sm:$0xff] %vm678_vm2, %v668_v11  ;;  %v653_v13 = vsel %vm589_vm0, %v557_v5, %v621_v9  ;;  %v661_v14 = vsel %vm597_vm1, %v565_v6, %v629_v10  ;;  %v495_v15 = vpop.f32.mrf.mxu2  ;;  %v515_v17 = vpop.f32.mrf.mxu3 }
  0xe1   : > { %709 = vst.msk [vmem:[%s1046_s14 + $0xf0] sm:$0xff] %vm678_vm2, %v676_v12  ;;  %v496_v19 = vadd.f32 %v1037_v24, %v495_v15  ;;  %v516_v20 = vadd.f32 %v1037_v24, %v515_v17 }
  0xe2   : > { %686 = vst.msk [vmem:[%s1046_s14 + $0x38] sm:$0xff] %vm678_vm2, %v653_v13 }
  0xe3   : > { %694 = vst.msk [vmem:[%s1046_s14 + $0x78] sm:$0xff] %vm678_vm2, %v661_v14  ;;  %v573_v21 = vadd.f32 %v541_v16, %v496_v19  ;;  %v581_v22 = vadd.f32 %v549_v18, %v516_v20 }
  0xe5   : > { %vm605_vm3 = vcmp.ge.f32.partialorder %v573_v21, 0.0  ;;  %v637_v23 = vmul.f32 0.01, %v573_v21  ;;  %vm613_vm4 = vcmp.ge.f32.partialorder %v581_v22, 0.0  ;;  %v645_v25 = vmul.f32 0.01, %v581_v22 }
  0xe7   : > { %v669_v26 = vsel %vm605_vm3, %v573_v21, %v637_v23  ;;  %v677_v27 = vsel %vm613_vm4, %v581_v22, %v645_v25 }
  0xe8   : > { %702 = vst.msk [vmem:[%s1046_s14 + $0xb8] sm:$0xff] %vm678_vm2, %v669_v26 }
  0xe9   : > { %710 = vst.msk [vmem:[%s1046_s14 + $0xf8] sm:$0xff] %vm678_vm2, %v677_v27 }
  0xea PF: > { %s14_s15 = sadd.s32 1, %s938_s15  }
  0xeb   : > { %p11_p4 = scmp.ge.s32.totalorder %s14_s15, 4  }
  0xed   :  { %13 = sbr.rel (!%p11_p4) target bundleno = 1 (0x1), region = 69 }

</bundles_post_ra>
